<compile_context>
chip_gen: v7x
topology: tpu7x:2x2x1
jax: 0.10.0
libtpu: 0.0.40
codegen_flags: <defaults>
</compile_context>

<pallas_src>
import jax
import jax.numpy as jnp
from jax.experimental import pallas as pl
from jax.experimental.pallas import tpu as pltpu


_LANES = 1024                      # lane-dense last dim (multiple of 128)
_TARGET_BLOCK_BYTES = 2 << 20      # ~2 MiB blocks: near roofline, v5e-safe


def _log_sqrt_kernel(x_ref, o_ref):
    # Elementwise sqrt(log(x)); log/sqrt go to the EUP (free slot vs VALU).
    # TODO(synk): on v7x with bf16 inputs, compute directly in bf16 if a
    # bundle dump shows the single EUP slot saturating (v5e has no bf16 EUP,
    # so the f32 upcast is kept as the portable default).
    x = x_ref[...].astype(jnp.float32)
    o_ref[...] = jnp.sqrt(jnp.log(x)).astype(o_ref.dtype)


def _run_slab(x2d, block_rows):
    """Run the elementwise kernel over a 2D slab (rows, lanes).

    `block_rows` must either divide into (8,*) tiles or equal `rows`
    (full-extent block).  A partial last block (rows % block_rows != 0) is
    masked by Pallas -- out-of-bounds rows may compute NaN but are never
    stored.
    """
    rows, lanes = x2d.shape
    itemsize = jnp.dtype(x2d.dtype).itemsize
    block_bytes = block_rows * lanes * itemsize
    # Explicit VMEM budget: double-buffered in + out blocks, +25% headroom,
    # +1 MiB for Mosaic internal scratch; floor at 4 MiB.  Portable across
    # v5e (16 MiB scoped default) / v6e / v7x.
    vmem_limit = max(int(2 * 2 * block_bytes * 1.25) + (1 << 20), 4 << 20)
    streamed = rows * lanes

    return pl.pallas_call(
        _log_sqrt_kernel,
        out_shape=jax.ShapeDtypeStruct((rows, lanes), x2d.dtype),
        grid=(pl.cdiv(rows, block_rows),),
        in_specs=[pl.BlockSpec((block_rows, lanes), lambda i: (i, 0))],
        out_specs=pl.BlockSpec((block_rows, lanes), lambda i: (i, 0)),
        compiler_params=pltpu.CompilerParams(
            dimension_semantics=("parallel",),
            vmem_limit_bytes=vmem_limit),
        cost_estimate=pl.CostEstimate(
            flops=0,
            transcendentals=2 * streamed,            # log + sqrt per element
            bytes_accessed=2 * streamed * itemsize,  # pure bandwidth
        ),
    )(x2d)


def dace_module_forward(x):
    """Pallas implementation of DaceModule(MyModule).forward(x).

    Accepts any floating-point array of any shape (the op is purely
    elementwise, hence layout-agnostic).  Returns an array with the same
    shape and dtype as the input.
    """
    if not jnp.issubdtype(x.dtype, jnp.floating):
        raise TypeError(
            "dace_module_forward supports floating-point inputs only "
            f"(got {x.dtype}); cast to float first.")

    orig_shape = x.shape
    n = x.size
    itemsize = jnp.dtype(x.dtype).itemsize

    flat = x.reshape(-1)

    # Target block rows (~2 MiB): 512 for f32, 1024 for bf16 -- multiples of
    # the (8 / 16) sublane packing requirement.
    tgt_rows = max(8, _TARGET_BLOCK_BYTES // (_LANES * itemsize))

    rows_aligned = n // _LANES          # full 1024-wide rows
    tail = n - rows_aligned * _LANES    # 0 .. 1023 leftover elements

    outs = []
    if rows_aligned > 0:
        # Prefix slice at offset 0 + reshape: no HBM copy, unlike jnp.pad.
        x2d = flat[: rows_aligned * _LANES].reshape(rows_aligned, _LANES)
        block_rows = min(rows_aligned, tgt_rows)
        outs.append(_run_slab(x2d, block_rows).reshape(-1))
    if tail > 0:
        # Tiny single full-extent block: exempt from (8,128) divisibility.
        tail2d = flat[rows_aligned * _LANES:].reshape(1, tail)
        outs.append(_run_slab(tail2d, 1).reshape(-1))

    out_flat = outs[0] if len(outs) == 1 else jnp.concatenate(outs)
    return out_flat.reshape(orig_shape)


if __name__ == "__main__":
    key = jax.random.PRNGKey(0)
    # Small NCHW input consistent with a PyTorch conv-style layout.
    # Values in [1, 5] so log(x) >= 0 and sqrt(log(x)) is real (matches the
    # docstring example domain, e.g. torch.ones -> zeros).
    x = jax.random.uniform(key, (2, 4, 16, 16), dtype=jnp.float32,
                           minval=1.0, maxval=5.0)

    y = jax.block_until_ready(dace_module_forward(x))

    # Sanity check against pure-JAX reference.
    ref = jnp.sqrt(jnp.log(x))
    assert y.shape == x.shape and y.dtype == x.dtype
    assert jnp.allclose(y, ref, atol=1e-6, rtol=1e-5)

    # Docstring example: ones -> zeros.
    ones = jnp.ones((2, 4, 16, 16), dtype=jnp.float32)
    z = jax.block_until_ready(dace_module_forward(ones))
    assert jnp.allclose(z, jnp.zeros_like(ones), atol=1e-7)

    # Odd element count (exercises the aligned-prefix / ragged-tail path).
    x_odd = jax.random.uniform(jax.random.PRNGKey(1), (3, 5, 7),
                               dtype=jnp.float32, minval=1.0, maxval=5.0)
    y_odd = jax.block_until_ready(dace_module_forward(x_odd))
    assert jnp.allclose(y_odd, jnp.sqrt(jnp.log(x_odd)), atol=1e-6, rtol=1e-5)

    # Larger, non-block-multiple row count (partial last block, no padding).
    x_big = jax.random.uniform(jax.random.PRNGKey(2), (700, 1024),
                               dtype=jnp.float32, minval=1.0, maxval=5.0)
    y_big = jax.block_until_ready(dace_module_forward(x_big))
    assert jnp.allclose(y_big, jnp.sqrt(jnp.log(x_big)), atol=1e-6, rtol=1e-5)

    print("KERNEL_OK")
</pallas_src>

<mosaic_0001>
module attributes {stable_mosaic.version = 11 : i64} {
  func.func @_log_sqrt_kernel(%arg0: i32, %arg1: memref<2x1024xf32, #tpu.memory_space<vmem>>, %arg2: memref<2x1024xf32, #tpu.memory_space<vmem>>) attributes {dimension_semantics = [#tpu.dimension_semantics<parallel>], iteration_bounds = array<i64: 1>, scalar_prefetch = 0 : i64, scratch_operands = 0 : i64, tpu.core_type = #tpu.core_type<tc>, window_params = [{transform_indices = @transform_0, window_bounds = array<i64: 2, 1024>}, {transform_indices = @transform_1, window_bounds = array<i64: 2, 1024>}]} {
    %c0 = arith.constant 0 : index
    %c0_0 = arith.constant 0 : index
    %0 = vector.load %arg1[%c0, %c0_0] : memref<2x1024xf32, #tpu.memory_space<vmem>>, vector<2x1024xf32>
    %1 = math.log %0 : vector<2x1024xf32>
    %2 = math.sqrt %1 : vector<2x1024xf32>
    %c0_1 = arith.constant 0 : index
    %c0_2 = arith.constant 0 : index
    %3 = vector.load %arg2[%c0_1, %c0_2] : memref<2x1024xf32, #tpu.memory_space<vmem>>, vector<2x1024xf32>
    tpu.vector_store %arg2[%c0_1, %c0_2], %2 {strides = array<i32>} : memref<2x1024xf32, #tpu.memory_space<vmem>>, vector<2x1024xf32>,
    return
  }
  func.func @transform_0(%arg0: i32) -> (i32, i32) {
    %c0_i32 = arith.constant 0 : i32
    %c0_i32_0 = arith.constant 0 : i32
    return %arg0, %c0_i32 : i32, i32
  }
  func.func @transform_1(%arg0: i32) -> (i32, i32) {
    %c0_i32 = arith.constant 0 : i32
    %c0_i32_0 = arith.constant 0 : i32
    return %arg0, %c0_i32 : i32, i32
  }
}

</mosaic_0001>

<bundles_post_ra>
// kernel: tpu_custom_call.1
= control target key start
LH: loop header
LB: loop body
LE: loop exit
PB: predicated region body
PF: predicated region fallthrough
CT: control target
= control target key end

     0   :  { %6 = vsyncpa [#allocation3], 0  ;;  %s152_s0 = inlined_call_operand.hbm [shape: f32[2,1024], index: 0, kind: input, shape index: {}]   ;;  %s153_s1 = inlined_call_operand.hbm [shape: f32[2,1024], index: 1, kind: output, shape index: {}]  }
   0x1   :  { %7 = vsyncpa [#allocation4], 0  ;;  %s116_s6 = smov [#allocation2]   ;;  %s68_s10 = scalar_lea.hbm %s152_s0, 256 }
   0x2   :  { %s14_s7 = sshll.u32 %s116_s6, 4  ;;  %p69_p0 = scmp.ne.s32.totalorder %s152_s0, %s68_s10  ;;  %s15_s7 = int_to_ptr.vmem [resolvable:$true] %s14_s7 }
   0x3   :  { %p72_p1 = scmp.lt.u32.totalorder %s68_s10, %s152_s0 }
   0x5   :  { %p74_p2 = pnand %p72_p1, %p69_p0 }
   0x7   :  { %77 = shalt.err (!%p74_p2)
}
   0x8   :  { %s78_s15 = scalar_lea.vmem %s15_s7, 256  ;;  %p83_p4 = scmp.lt.s32.totalorder %s15_s7, %s15_s7 }
   0x9   :  { %p79_p3 = scmp.ne.s32.totalorder %s15_s7, %s78_s15  ;;  %p84_p5 = scmp.lt.s32.totalorder %s78_s15, %s78_s15 }
   0xb   :  { %p85_p6 = por %p84_p5, %p83_p4 }
   0xd   :  { %p86_p7 = pnand %p85_p6, %p79_p3 }
   0xf   :  { %89 = shalt.err (!%p86_p7)
}
  0x10   :  { %17 = dma.hbm_to_vmem [thread:$0]  %s152_s0, 256, %s15_s7, [#allocation3]  }
  0x11   :  { %112 = dma.done.wait [#allocation3], 256  }
  0x12   :  { %113 = vsyncadd [#allocation3], 4294967040  ;;  %v21_v0 = vld [vmem:[#allocation2] sm:$0xff]  ;;  %v22_v1 = vld [vmem:[#allocation2 + $0x8] sm:$0xff]  ;;  %s117_s0 = smov [#allocation5]  }
  0x13   :  { %60 = vlog2.f32 %v21_v0  ;;  %s49_s18 = sshll.u32 %s117_s0, 4  ;;  %s50_s18 = int_to_ptr.vmem [resolvable:$true] %s49_s18 }
  0x14   :  { %62 = vlog2.f32 %v22_v1  ;;  %s90_s19 = scalar_lea.vmem %s50_s18, 256  ;;  %p95_p9 = scmp.lt.s32.totalorder %s50_s18, %s50_s18 }
  0x15   :  { %p91_p8 = scmp.ne.s32.totalorder %s50_s18, %s90_s19  ;;  %p96_p10 = scmp.lt.s32.totalorder %s90_s19, %s90_s19 }
  0x17   :  { %p97_p11 = por %p96_p10, %p95_p9 }
  0x19   :  { %p98_p12 = pnand %p97_p11, %p91_p8 }
  0x1d   :  { %v61_v2 = vpop.eup %60 }
  0x1e   :  { %v63_v3 = vpop.eup %62  ;;  %v24_v4 = vmul.f32 0.6931472, %v61_v2 }
  0x1f   :  { %v26_v5 = vmul.f32 0.6931472, %v63_v3 }
  0x20   :  { %64 = vrsqrt.f32 %v24_v4  ;;  %vm29_vm0 = vcmp.eq.f32.partialorder %v24_v4, inf  ;;  %v32_v7 = vand.u32 2147483648, %v24_v4  ;;  %vm31_vm1 = vcmp.eq.f32.partialorder %v24_v4, 0.0 }
  0x21   :  { %66 = vrsqrt.f32 %v26_v5  ;;  %vm36_vm2 = vcmp.eq.f32.partialorder %v26_v5, inf  ;;  %v39_v10 = vand.u32 2147483648, %v26_v5  ;;  %vm38_vm3 = vcmp.eq.f32.partialorder %v26_v5, 0.0 }
  0x2a   :  { %v65_v6 = vpop.eup %64 }
  0x2b   :  { %v67_v8 = vpop.eup %66  ;;  %v28_v9 = vmul.f32 %v65_v6, %v24_v4 }
  0x2c   :  { %v35_v11 = vmul.f32 %v67_v8, %v26_v5 }
  0x2d   :  { %v30_v12 = vsel %vm29_vm0, %v24_v4, %v28_v9 }
  0x2e   :  { %v33_v13 = vsel %vm31_vm1, %v32_v7, %v30_v12  ;;  %v37_v14 = vsel %vm36_vm2, %v26_v5, %v35_v11 }
  0x2f   :  { %41 = vst [vmem:[#allocation5] sm:$0xff] %v33_v13  ;;  %v40_v15 = vsel %vm38_vm3, %v39_v10, %v37_v14 }
  0x30   :  { %42 = vst [vmem:[#allocation5 + $0x8] sm:$0xff] %v40_v15 }
  0x31   :  { %101 = shalt.err (!%p98_p12)
}
  0x32   :  { %s102_s22 = scalar_lea.hbm %s153_s1, 256 }
  0x33   :  { %p103_p13 = scmp.ne.s32.totalorder %s153_s1, %s102_s22  ;;  %p106_p0 = scmp.lt.u32.totalorder %s102_s22, %s153_s1 }
  0x35   :  { %p108_p1 = pnand %p106_p0, %p103_p13 }
  0x37   :  { %111 = shalt.err (!%p108_p1)
}
  0x38   :  { %52 = dma.vmem_to_hbm [thread:$0]  %s50_s18, 256, %s153_s1, [#allocation4]  }
  0x39   :  { %114 = dma.done.wait [#allocation4], 256  }
  0x3a   :  { %115 = vsyncadd [#allocation4], 4294967040 }
  0x3b   :  { %56 = vsyncpa [#allocation3], 1 }
  0x3c   :  { %57 = vsyncpa [#allocation4], 1 }

</bundles_post_ra>
